<compile_context>
chip_gen: v7x
topology: tpu7x:2x2x1
jax: 0.10.0
libtpu: 0.0.40
codegen_flags: <defaults>
</compile_context>

<pallas_src>
import functools

import jax
import jax.numpy as jnp
from jax.experimental import pallas as pl
from jax.experimental.pallas import tpu as pltpu


# ----------------------------------------------------------------------------
# Kernels
# ----------------------------------------------------------------------------
def _pe_add_kernel(x_ref, pe_ref, o_ref, *, batch):
    # x_ref: (ts, B*D)   pe_ref: (ts, D)  -> repeat pe across folded batch lanes
    pe = jnp.tile(pe_ref[...], (1, batch)) if batch > 1 else pe_ref[...]
    o_ref[...] = (x_ref[...] + pe).astype(o_ref.dtype)


def _pe_add_dropout_kernel(x_ref, pe_ref, bits_ref, o_ref, *, batch, threshold, scale):
    # Inverted dropout: keep iff bits >= threshold, where threshold = p * 2^32.
    pe = jnp.tile(pe_ref[...], (1, batch)) if batch > 1 else pe_ref[...]
    y = x_ref[...] + pe                                   # promoted compute dtype
    keep = bits_ref[...] >= jnp.uint32(threshold)         # integer compare, no f32 convert
    y = jnp.where(keep, y * jnp.asarray(scale, y.dtype), jnp.zeros_like(y))
    o_ref[...] = y.astype(o_ref.dtype)


# ----------------------------------------------------------------------------
# Helpers
# ----------------------------------------------------------------------------
_VMEM_LIMIT_BYTES = 32 * 1024 * 1024   # explicit: > v5e's 16 MiB scoped default,
                                       # comfortably within v7x's 64 MiB physical.


def _choose_seq_tile(seq_len: int, row_bytes: int, target_bytes: int = 2 << 20) -> int:
    """Largest divisor of seq_len whose block is <= ~2 MiB, preferring multiples of 8."""
    max_rows = max(1, target_bytes // max(row_bytes, 1))
    divisors = [d for d in range(1, seq_len + 1) if seq_len % d == 0]
    candidates = [d for d in divisors if d <= max_rows] or [divisors[0]]
    mult8 = [d for d in candidates if d % 8 == 0]
    return max(mult8) if mult8 else max(candidates)


def _dropout_threshold(p: float) -> int:
    return min(int(round(float(p) * 2.0 ** 32)), 2 ** 32 - 1)


# ----------------------------------------------------------------------------
# Wrapper
# ----------------------------------------------------------------------------
def learnable_positional_encoding(
    x: jax.Array,
    pe: jax.Array,
    *,
    dropout_p: float = 0.1,
    training: bool = False,
    rng: jax.Array | None = None,
    seq_tile: int | None = None,
) -> jax.Array:
    """x: (S, B, D), pe: (max_len, 1, D).  Returns (S, B, D)."""
    S, B, D = x.shape
    max_len, one, d_model = pe.shape
    assert one == 1 and d_model == D and S <= max_len

    BD = B * D
    x2 = x.reshape(S, BD)          # free contiguous reshape -> lane-dense blocks
    pe2 = pe.reshape(max_len, D)   # pass the full table; BlockSpec only touches rows < S

    itemsize = jnp.dtype(x.dtype).itemsize
    ts = _choose_seq_tile(S, BD * itemsize) if seq_tile is None else seq_tile
    assert S % ts == 0
    grid = (S // ts,)

    out_shape = jax.ShapeDtypeStruct((S, BD), x.dtype)
    compiler_params = pltpu.CompilerParams(
        dimension_semantics=("parallel",),       # independent seq tiles: megacore-friendly
        vmem_limit_bytes=_VMEM_LIMIT_BYTES,
    )

    x_spec = pl.BlockSpec((ts, BD), lambda i: (i, 0))
    pe_spec = pl.BlockSpec((ts, D), lambda i: (i, 0))
    bits_spec = pl.BlockSpec((ts, BD), lambda i: (i, 0))
    out_spec = pl.BlockSpec((ts, BD), lambda i: (i, 0))

    if not training or dropout_p == 0.0:
        # NOTE: a lone broadcast-add is emitted fine by XLA; keep the Pallas path
        # here so the op can be profiled/fused with neighboring Pallas stages.
        out2 = pl.pallas_call(
            functools.partial(_pe_add_kernel, batch=B),
            out_shape=out_shape,
            grid=grid,
            in_specs=[x_spec, pe_spec],
            out_specs=out_spec,
            compiler_params=compiler_params,
        )(x2, pe2)
        return out2.reshape(S, B, D)

    # Training mode: fused add + inverted dropout.
    if rng is None:
        rng = jax.random.PRNGKey(0)
    bits = jax.random.bits(rng, (S, BD), dtype=jnp.uint32)
    kernel = functools.partial(
        _pe_add_dropout_kernel,
        batch=B,
        threshold=_dropout_threshold(dropout_p),
        scale=1.0 / (1.0 - float(dropout_p)),
    )
    out2 = pl.pallas_call(
        kernel,
        out_shape=out_shape,
        grid=grid,
        in_specs=[x_spec, pe_spec, bits_spec],
        out_specs=out_spec,
        compiler_params=compiler_params,
    )(x2, pe2, bits)
    return out2.reshape(S, B, D)


# ----------------------------------------------------------------------------
# Demo / self-test
# ----------------------------------------------------------------------------
if __name__ == "__main__":
    d_model = 32
    max_len = 1024
    seq_len = 8
    batch = 2
    dropout_p = 0.1

    key = jax.random.PRNGKey(0)
    kx, kpe, kdrop = jax.random.split(key, 3)

    # Parameter init mirroring nn.init.uniform_(pe, -0.02, 0.02)
    pe = jax.random.uniform(
        kpe, (max_len, 1, d_model), dtype=jnp.float32, minval=-0.02, maxval=0.02
    )
    # Input: (seq_len, batch, d_model) — seq-first layout, same as the PyTorch module
    x = jax.random.normal(kx, (seq_len, batch, d_model), dtype=jnp.float32)

    ref = x + pe[:seq_len]

    # Eval mode (dropout == identity): must match reference.
    out_eval = jax.block_until_ready(
        learnable_positional_encoding(x, pe, dropout_p=dropout_p, training=False)
    )
    assert out_eval.shape == x.shape and out_eval.dtype == x.dtype
    assert jnp.allclose(out_eval, ref, atol=1e-6, rtol=1e-6)

    # Training mode (fused add + inverted dropout): exact check against the same
    # bits / threshold the kernel uses.
    out_train = jax.block_until_ready(
        learnable_positional_encoding(
            x, pe, dropout_p=dropout_p, training=True, rng=kdrop
        )
    )
    bits_ref = jax.random.bits(kdrop, (seq_len, batch * d_model), dtype=jnp.uint32)
    keep_ref = (bits_ref >= jnp.uint32(_dropout_threshold(dropout_p))).reshape(
        seq_len, batch, d_model
    )
    ref_train = jnp.where(keep_ref, ref / (1.0 - dropout_p), 0.0).astype(x.dtype)
    assert out_train.shape == x.shape and out_train.dtype == x.dtype
    assert jnp.allclose(out_train, ref_train, atol=1e-6, rtol=1e-6)

    print("KERNEL_OK")
</pallas_src>

<mosaic_0001>
module attributes {stable_mosaic.version = 11 : i64} {
  func.func @_pe_add_kernel(%arg0: i32, %arg1: memref<8x64xf32, #tpu.memory_space<vmem>>, %arg2: memref<8x32xf32, #tpu.memory_space<vmem>>, %arg3: memref<8x64xf32, #tpu.memory_space<vmem>>) attributes {dimension_semantics = [#tpu.dimension_semantics<parallel>], iteration_bounds = array<i64: 1>, scalar_prefetch = 0 : i64, scratch_operands = 0 : i64, tpu.core_type = #tpu.core_type<tc>, window_params = [{transform_indices = @transform_0, window_bounds = array<i64: 8, 64>}, {transform_indices = @transform_1, window_bounds = array<i64: 8, 32>}, {transform_indices = @transform_2, window_bounds = array<i64: 8, 64>}]} {
    %c0 = arith.constant 0 : index
    %c0_0 = arith.constant 0 : index
    %0 = vector.load %arg2[%c0, %c0_0] : memref<8x32xf32, #tpu.memory_space<vmem>>, vector<8x32xf32>
    %1 = tpu.concatenate %0, %0 in 1 : vector<8x32xf32>, vector<8x32xf32> -> vector<8x64xf32>
    %c0_1 = arith.constant 0 : index
    %c0_2 = arith.constant 0 : index
    %2 = vector.load %arg1[%c0_1, %c0_2] : memref<8x64xf32, #tpu.memory_space<vmem>>, vector<8x64xf32>
    %3 = arith.addf %2, %1 : vector<8x64xf32>
    %c0_3 = arith.constant 0 : index
    %c0_4 = arith.constant 0 : index
    %4 = vector.load %arg3[%c0_3, %c0_4] : memref<8x64xf32, #tpu.memory_space<vmem>>, vector<8x64xf32>
    tpu.vector_store %arg3[%c0_3, %c0_4], %3 {strides = array<i32>} : memref<8x64xf32, #tpu.memory_space<vmem>>, vector<8x64xf32>,
    return
  }
  func.func @transform_0(%arg0: i32) -> (i32, i32) {
    %c0_i32 = arith.constant 0 : i32
    %c0_i32_0 = arith.constant 0 : i32
    return %arg0, %c0_i32 : i32, i32
  }
  func.func @transform_1(%arg0: i32) -> (i32, i32) {
    %c0_i32 = arith.constant 0 : i32
    %c0_i32_0 = arith.constant 0 : i32
    return %arg0, %c0_i32 : i32, i32
  }
  func.func @transform_2(%arg0: i32) -> (i32, i32) {
    %c0_i32 = arith.constant 0 : i32
    %c0_i32_0 = arith.constant 0 : i32
    return %arg0, %c0_i32 : i32, i32
  }
}

</mosaic_0001>

<bundles_post_ra>
// kernel: tpu_custom_call.1
= control target key start
LH: loop header
LB: loop body
LE: loop exit
PB: predicated region body
PF: predicated region fallthrough
CT: control target
= control target key end

     0   :  { %s98_s0 = inlined_call_operand.vmem [shape: f32[8,64], index: 0, kind: input, shape index: {}]   ;;  %s99_s1 = inlined_call_operand.vmem [shape: f32[1024,32], index: 1, kind: input, shape index: {}]   ;;  %s100_s2 = inlined_call_operand.hbm [shape: f32[8,64], index: 2, kind: output, shape index: {}]  }
   0x1   :  { %v12_v0 = vld [vmem:[%s99_s1] sm:$0xff] }
   0x2   :  { %7 = vsyncpa [#allocation3], 0  ;;  %s63_s11 = smov 32   ;;  %vm17_vm0 = vcmask 261120   ;;  %v19_v1 = vld [vmem:[%s98_s0] sm:$0xff]  ;;  %s64_s14 = smov [#allocation2]  }
   0x3   :  { %14 = vrot.lane.b32.xlu0 %v12_v0, %s63_s11  ;;  %s29_s15 = sshll.u32 %s64_s14, 4  ;;  %vm21_vm1 = vcmask 523264   ;;  %s30_s15 = int_to_ptr.vmem [resolvable:$true] %s29_s15 }
   0x4   :  { %s39_s16 = scalar_lea.vmem %s30_s15, 128  ;;  %p44_p1 = scmp.lt.s32.totalorder %s30_s15, %s30_s15 }
   0x5   :  { %p40_p0 = scmp.ne.s32.totalorder %s30_s15, %s39_s16  ;;  %p45_p2 = scmp.lt.s32.totalorder %s39_s16, %s39_s16 }
   0x7   :  { %p46_p3 = por %p45_p2, %p44_p1 }
   0x9   :  { %p47_p4 = pnand %p46_p3, %p40_p0 }
  0x75   :  { %v15_v2 = vpop.permute.xlu0 %14 }
  0x76   :  { %v18_v3 = vsel %vm17_vm0, %v12_v0, %v15_v2 }
  0x77   :  { %v20_v4 = vadd.f32 %v19_v1, %v18_v3 }
  0x79   :  { %22 = vst.msk [vmem:[#allocation2] sm:$0xff] %vm21_vm1, %v20_v4 }
  0x7a   :  { %50 = shalt.err (!%p47_p4)
}
  0x7b   :  { %s51_s18 = scalar_lea.hbm %s100_s2, 128 }
  0x7c   :  { %p52_p5 = scmp.ne.s32.totalorder %s100_s2, %s51_s18  ;;  %p55_p6 = scmp.lt.u32.totalorder %s51_s18, %s100_s2 }
  0x7e   :  { %p57_p7 = pnand %p55_p6, %p52_p5 }
  0x80   :  { %60 = shalt.err (!%p57_p7)
}
  0x81   :  { %32 = dma.vmem_to_hbm [thread:$0]  %s30_s15, 128, %s100_s2, [#allocation3]  }
  0x82   :  { %61 = dma.done.wait [#allocation3], 128  }
  0x83   :  { %62 = vsyncadd [#allocation3], 4294967168 }
  0x84   :  { %36 = vsyncpa [#allocation3], 1 }

</bundles_post_ra>
